<compile_context>
chip_gen: v5e
topology: v5e:2x2
jax: 0.10.0
libtpu: 0.0.40
codegen_flags: <defaults>
</compile_context>

<pallas_src>
import functools

import jax
import jax.numpy as jnp
from jax.experimental import pallas as pl
from jax.experimental.pallas import tpu as pltpu


def _rope_kernel(pos_ref, inv_ts_ref, x_ref, o_ref, *, math_dtype):
    # pos_ref:    (1, tT, 1)    f32  positions for this (batch, seq-tile)
    # inv_ts_ref: (1, D)        f32  [-1/timescale, +1/timescale] (sign folded in)
    # x_ref:      (1, tT, H, D)      inputs
    # o_ref:      (1, tT, H, D)      rotated outputs
    D = x_ref.shape[-1]
    half = D // 2

    pos = pos_ref[...]                           # (1, tT, 1)
    inv_ts = inv_ts_ref[...]                     # (1, D)

    # Full-D-lane sinusoid.  Lanes [0, half) hold -1/ts, lanes [half, D) hold
    # +1/ts.  cos is even -> cos(sinusoid) == [cos, cos] on every lane;
    # sin(sinusoid) == [-sin, +sin].  No lane concatenates, no sign multiply.
    sinusoid = pos * inv_ts[:, None, :]          # (1, tT, D) f32
    cos = jnp.cos(sinusoid)[:, :, None, :].astype(math_dtype)   # (1, tT, 1, D)
    sin = jnp.sin(sinusoid)[:, :, None, :].astype(math_dtype)   # (1, tT, 1, D)

    # Rotate-half with one XLU roll (shift == D/2, so direction is irrelevant),
    # performed in the native dtype; upcast only if the math dtype is wider.
    x = x_ref[...]                               # (1, tT, H, D)
    x_rot = pltpu.roll(x, shift=half, axis=3)
    if x.dtype != math_dtype:
        x = x.astype(math_dtype)
        x_rot = x_rot.astype(math_dtype)

    # out = x * [cos, cos] + roll(x) * [-sin, sin]; single full-D store.
    o_ref[...] = (x * cos + x_rot * sin).astype(o_ref.dtype)


def _has_bf16_valu():
    """True on parts with a native bf16 VPU (v6e and later)."""
    try:
        kind = jax.devices()[0].device_kind.lower()
    except Exception:
        return False
    return not any(old in kind for old in ("v2", "v3", "v4", "v5"))


def _vmem_plan(vmem_limit_bytes):
    """(vmem_limit_bytes, working_set_budget_bytes) sized to the actual chip."""
    cap = 64 * 1024 * 1024                        # conservative (v7x-sized) fallback
    try:
        cap = int(pltpu.get_tpu_info().vmem_capacity_bytes)
    except Exception:
        pass
    limit = int(cap * 3 // 4) if vmem_limit_bytes is None else int(vmem_limit_bytes)
    budget = int(limit * 4 // 5)                  # headroom for sem/metadata/temps
    return limit, budget


def _pick_block_t(T, row_bytes, budget_bytes):
    """Largest seq-tile whose per-step working set fits the budget.

    Prefers a multiple-of-8 divisor of T (no padded trailing grid step); falls
    back to the largest multiple of 8 that fits if T has no good divisor.
    """
    tile_max = max(8, int(budget_bytes) // max(1, int(row_bytes)))
    if tile_max >= T:
        return T
    tile_max = max(8, (tile_max // 8) * 8)
    best_div, i = 0, 1
    while i * i <= T:
        if T % i == 0:
            for d in (i, T // i):
                if d <= tile_max and d % 8 == 0 and d > best_div:
                    best_div = d
        i += 1
    if best_div >= max(8, tile_max // 2):
        return best_div
    return tile_max


def rotary_embedding(inputs, position, *, min_timescale=1, max_timescale=10000,
                     compute_dtype=None, math_dtype=None, block_t=None,
                     vmem_limit_bytes=None):
    """Applies RoPE. inputs: (B, T, H, D); position: (B, T).

    compute_dtype=None -> output dtype matches the input dtype (halves HBM write
    traffic for bf16).  Pass jnp.float32 to reproduce the PyTorch module's
    default output dtype exactly.
    """
    B, T, H, D = inputs.shape
    if D % 2 != 0:
        raise ValueError("Embedding dim must be even for RoPE.")
    half = D // 2
    in_dtype = jnp.dtype(inputs.dtype)
    out_dtype = jnp.dtype(in_dtype if compute_dtype is None else compute_dtype)

    # Elementwise math dtype: bf16 only when in == out == bf16 on a bf16-VALU
    # part (v6e/v7x); otherwise f32 (v5e, f32 inputs, or f32 outputs).
    if math_dtype is None:
        if in_dtype == out_dtype and in_dtype == jnp.dtype(jnp.bfloat16) and _has_bf16_valu():
            math_dtype = in_dtype
        else:
            math_dtype = jnp.dtype(jnp.float32)
    else:
        math_dtype = jnp.dtype(math_dtype)

    # Constant table (same values as the PyTorch __init__), stored as the signed
    # reciprocal [-1/ts, +1/ts] so the kernel needs one multiply, full-D-lane
    # sin/cos, and no concatenates / sign vectors.
    fraction = 2.0 * jnp.arange(0, half, dtype=jnp.float32) / float(D)
    timescale = (float(min_timescale) *
                 (float(max_timescale) / float(min_timescale)) ** fraction)
    inv_ts = (1.0 / timescale).astype(jnp.float32)
    inv_ts_signed = jnp.concatenate([-inv_ts, inv_ts]).reshape(1, D)

    # (B, T, 1): positions land on sublanes; block (1, tT, 1) is trivially legal.
    position = position.astype(jnp.float32).reshape(B, T, 1)

    # Tile sizing from the chip's VMEM: 2x double-buffered in/out tiles plus
    # ~2 math-dtype temporaries per element, plus the (tT, D) sin/cos/sinusoid.
    limit_bytes, budget_bytes = _vmem_plan(vmem_limit_bytes)
    row_bytes = (H * D * (2 * in_dtype.itemsize + 2 * out_dtype.itemsize
                          + 2 * math_dtype.itemsize) + 4 * D * 4)
    if block_t is None:
        block_t = _pick_block_t(T, row_bytes, budget_bytes)
    block_t = int(min(block_t, T))
    grid = (B, pl.cdiv(T, block_t))

    cost = pl.CostEstimate(
        flops=3 * B * T * H * D,
        transcendentals=2 * B * T * D,
        bytes_accessed=B * T * H * D * (in_dtype.itemsize + out_dtype.itemsize)
        + B * T * 4 + D * 4,
    )

    kernel = functools.partial(_rope_kernel, math_dtype=math_dtype)

    # TODO(synk): if profiling on v7x shows one TensorCore idle with B == 1 and
    # few T tiles, add an explicit core axis via pl.core_map / CORE_PARALLEL.
    return pl.pallas_call(
        kernel,
        out_shape=jax.ShapeDtypeStruct((B, T, H, D), out_dtype),
        grid_spec=pltpu.PrefetchScalarGridSpec(
            num_scalar_prefetch=0,
            grid=grid,
            in_specs=[
                pl.BlockSpec((1, block_t, 1), lambda b, t: (b, t, 0)),        # position
                pl.BlockSpec((1, D), lambda b, t: (0, 0)),                    # +-1/timescale
                pl.BlockSpec((1, block_t, H, D), lambda b, t: (b, t, 0, 0)),  # inputs
            ],
            out_specs=pl.BlockSpec((1, block_t, H, D), lambda b, t: (b, t, 0, 0)),
        ),
        compiler_params=pltpu.CompilerParams(
            dimension_semantics=("parallel", "parallel"),
            vmem_limit_bytes=limit_bytes),
        cost_estimate=cost,
    )(position, inv_ts_signed, inputs)


def rotary_embedding_ref(inputs, position, *, min_timescale=1,
                         max_timescale=10000, compute_dtype=None):
    """Pure-JAX reference matching the PyTorch forward exactly."""
    B, T, H, D = inputs.shape
    half = D // 2
    out_dtype = jnp.dtype(inputs.dtype if compute_dtype is None else compute_dtype)
    fraction = 2.0 * jnp.arange(0, half, dtype=jnp.float32) / float(D)
    timescale = (float(min_timescale) *
                 (float(max_timescale) / float(min_timescale)) ** fraction
                 ).astype(jnp.float32)
    pos = position.astype(jnp.float32)[..., None, None]          # (B, T, 1, 1)
    sinusoid = pos / timescale                                    # (B, T, 1, half)
    sin, cos = jnp.sin(sinusoid), jnp.cos(sinusoid)
    x = inputs.astype(jnp.float32)
    first_half, second_half = x[..., :half], x[..., half:]
    first_part = first_half * cos - second_half * sin
    second_part = second_half * cos + first_half * sin
    return jnp.concatenate([first_part.astype(out_dtype),
                            second_part.astype(out_dtype)], axis=-1)


if __name__ == "__main__":
    key = jax.random.PRNGKey(0)
    k1, k2 = jax.random.split(key)

    # 1) Narrow head dim (D = 32): roll path at sub-128 lanes, f32 in -> f32 out.
    B, T, H, D = 2, 8, 4, 32
    x32 = jax.random.normal(k1, (B, T, H, D), dtype=jnp.float32)
    pos32 = jnp.broadcast_to(jnp.arange(T, dtype=jnp.float32)[None, :], (B, T))
    out = jax.block_until_ready(rotary_embedding(x32, pos32))
    ref = rotary_embedding_ref(x32, pos32)
    assert out.shape == (B, T, H, D) and out.dtype == jnp.float32
    assert jnp.allclose(out, ref, atol=1e-4, rtol=1e-4)

    # 2) Lane-dense head dim (D = 128): single unmasked full-D store, f32.
    B2, T2, H2, D2 = 2, 16, 8, 128
    x128 = jax.random.normal(k2, (B2, T2, H2, D2), dtype=jnp.float32)
    pos128 = jnp.broadcast_to(jnp.arange(T2, dtype=jnp.float32)[None, :], (B2, T2))
    out2 = jax.block_until_ready(rotary_embedding(x128, pos128))
    ref2 = rotary_embedding_ref(x128, pos128)
    assert jnp.allclose(out2, ref2, atol=1e-4, rtol=1e-4)

    # 3) bf16 in -> bf16 out (bf16 elementwise math on v6e/v7x, f32 elsewhere).
    xb = x128.astype(jnp.bfloat16)
    out3 = jax.block_until_ready(rotary_embedding(xb, pos128))
    ref3 = rotary_embedding_ref(xb, pos128, compute_dtype=jnp.float32)
    assert out3.dtype == jnp.bfloat16
    assert jnp.allclose(out3.astype(jnp.float32), ref3, atol=5e-2, rtol=5e-2)

    # 4) PyTorch-exact output dtype (f32 out from bf16 in).
    out4 = jax.block_until_ready(rotary_embedding(xb, pos128, compute_dtype=jnp.float32))
    assert out4.dtype == jnp.float32
    assert jnp.allclose(out4, ref3, atol=5e-2, rtol=5e-2)

    print("KERNEL_OK")
</pallas_src>

<mosaic_0001>
module attributes {stable_mosaic.version = 11 : i64} {
  func.func @_rope_kernel(%arg0: i32, %arg1: i32, %arg2: memref<1x8x1xf32, #tpu.memory_space<vmem>>, %arg3: memref<1x32xf32, #tpu.memory_space<vmem>>, %arg4: memref<1x8x4x32xf32, #tpu.memory_space<vmem>>, %arg5: memref<1x8x4x32xf32, #tpu.memory_space<vmem>>) attributes {dimension_semantics = [#tpu.dimension_semantics<parallel>, #tpu.dimension_semantics<parallel>], iteration_bounds = array<i64: 2, 1>, scalar_prefetch = 0 : i64, scratch_operands = 0 : i64, tpu.core_type = #tpu.core_type<tc>, window_params = [{transform_indices = @transform_0, window_bounds = array<i64: 1, 8, 1>}, {pipeline_mode = #tpu.pipeline_mode<synchronous>, transform_indices = @transform_1, window_bounds = array<i64: 1, 32>}, {transform_indices = @transform_2, window_bounds = array<i64: 1, 8, 4, 32>}, {transform_indices = @transform_3, window_bounds = array<i64: 1, 8, 4, 32>}]} {
    %c0 = arith.constant 0 : index
    %c0_0 = arith.constant 0 : index
    %c0_1 = arith.constant 0 : index
    %0 = vector.load %arg2[%c0, %c0_0, %c0_1] : memref<1x8x1xf32, #tpu.memory_space<vmem>>, vector<1x8x1xf32>
    %c0_2 = arith.constant 0 : index
    %c0_3 = arith.constant 0 : index
    %1 = vector.load %arg3[%c0_2, %c0_3] : memref<1x32xf32, #tpu.memory_space<vmem>>, vector<1x32xf32>
    %2 = vector.shape_cast %1 : vector<1x32xf32> to vector<1x1x32xf32>
    %3 = vector.broadcast %0 : vector<1x8x1xf32> to vector<1x8x32xf32>
    %4 = vector.broadcast %2 : vector<1x1x32xf32> to vector<1x8x32xf32>
    %5 = arith.mulf %3, %4 : vector<1x8x32xf32>
    %6 = math.cos %5 : vector<1x8x32xf32>
    %7 = vector.shape_cast %6 : vector<1x8x32xf32> to vector<1x8x1x32xf32>
    %8 = math.sin %5 : vector<1x8x32xf32>
    %9 = vector.shape_cast %8 : vector<1x8x32xf32> to vector<1x8x1x32xf32>
    %c0_4 = arith.constant 0 : index
    %c0_5 = arith.constant 0 : index
    %c0_6 = arith.constant 0 : index
    %c0_7 = arith.constant 0 : index
    %10 = vector.load %arg4[%c0_4, %c0_5, %c0_6, %c0_7] : memref<1x8x4x32xf32, #tpu.memory_space<vmem>>, vector<1x8x4x32xf32>
    %c16_i32 = arith.constant 16 : i32
    %11 = tpu.dynamic_rotate %10 by %c16_i32 dim 3 : vector<1x8x4x32xf32>, i32 -> vector<1x8x4x32xf32>
    %12 = vector.broadcast %7 : vector<1x8x1x32xf32> to vector<1x8x4x32xf32>
    %13 = arith.mulf %10, %12 : vector<1x8x4x32xf32>
    %14 = vector.broadcast %9 : vector<1x8x1x32xf32> to vector<1x8x4x32xf32>
    %15 = arith.mulf %11, %14 : vector<1x8x4x32xf32>
    %16 = arith.addf %13, %15 : vector<1x8x4x32xf32>
    %c0_8 = arith.constant 0 : index
    %c0_9 = arith.constant 0 : index
    %c0_10 = arith.constant 0 : index
    %c0_11 = arith.constant 0 : index
    %17 = vector.load %arg5[%c0_8, %c0_9, %c0_10, %c0_11] : memref<1x8x4x32xf32, #tpu.memory_space<vmem>>, vector<1x8x4x32xf32>
    tpu.vector_store %arg5[%c0_8, %c0_9, %c0_10, %c0_11], %16 {strides = array<i32>} : memref<1x8x4x32xf32, #tpu.memory_space<vmem>>, vector<1x8x4x32xf32>,
    return
  }
  func.func @transform_0(%arg0: i32, %arg1: i32) -> (i32, i32, i32) {
    %c0_i32 = arith.constant 0 : i32
    %c0_i32_0 = arith.constant 0 : i32
    return %arg0, %arg1, %c0_i32 : i32, i32, i32
  }
  func.func @transform_1(%arg0: i32, %arg1: i32) -> (i32, i32) {
    %c0_i32 = arith.constant 0 : i32
    %c0_i32_0 = arith.constant 0 : i32
    %c0_i32_1 = arith.constant 0 : i32
    return %c0_i32, %c0_i32_0 : i32, i32
  }
  func.func @transform_2(%arg0: i32, %arg1: i32) -> (i32, i32, i32, i32) {
    %c0_i32 = arith.constant 0 : i32
    %c0_i32_0 = arith.constant 0 : i32
    %c0_i32_1 = arith.constant 0 : i32
    return %arg0, %arg1, %c0_i32, %c0_i32_0 : i32, i32, i32, i32
  }
  func.func @transform_3(%arg0: i32, %arg1: i32) -> (i32, i32, i32, i32) {
    %c0_i32 = arith.constant 0 : i32
    %c0_i32_0 = arith.constant 0 : i32
    %c0_i32_1 = arith.constant 0 : i32
    return %arg0, %arg1, %c0_i32, %c0_i32_0 : i32, i32, i32, i32
  }
}

</mosaic_0001>

<bundles_post_ra>
// kernel: tpu_custom_call.1
= control target key start
LH: loop header
LB: loop body
LE: loop exit
PB: predicated region body
PF: predicated region fallthrough
CT: control target
= control target key end

     0   :  { %8 = vsyncpa [#allocation3], 0  ;;  %s1425_s0 = inlined_call_operand.vmem [shape: f32[2,8,1], index: 0, kind: input, shape index: {}]   ;;  %s1426_s1 = inlined_call_operand.vmem [shape: f32[1,32], index: 1, kind: input, shape index: {}]   ;;  %s1427_s2 = inlined_call_operand.hbm [shape: f32[2,8,4,32], index: 2, kind: input, shape index: {}]   ;;  %s1428_s3 = inlined_call_operand.hbm [shape: f32[2,8,4,32], index: 3, kind: output, shape index: {}]  }
   0x1   :  { %10 = vsyncpa [#allocation3 + $0x1], 0 }
   0x2   :  { %11 = vsyncpa [#allocation4], 0 }
   0x3   :  { %13 = vsyncpa [#allocation4 + $0x1], 0  ;;  %s1115_s12 = smov 0   ;;  %s1117_s13 = smov 0  }
   0x4   :  { %s1119_s14 = smov 0   ;;  %s1121_s15 = smov 0  }
   0x5   :  { %s1123_s16 = smov 0   ;;  %s1125_s17 = smov 0  }
   0x6 LB: > { %s865_s18 = sadd.s32 4294967295, %s1079_s17   ;;  %s866_s19 = sadd.s32 4294967294, %s1079_s17   ;;  %s1079_s17 = sphi %s1125_s17, %s19_s17   ;;  %s1075_s16 = sphi %s1123_s16, %s1437_s16   ;;  %s1071_s15 = sphi %s1121_s15, %s1436_s15   ;;  %s1067_s14 = sphi %s1119_s14, %s1435_s14   ;;  %s1063_s13 = sphi %s1117_s13, %s1434_s13   ;;  %s1059_s12 = sphi %s1115_s12, %s1433_s12  }
   0x7   : > { %s31_s20 = sadd.s32 1, %s1075_s16  ;;  %s89_s21 = sadd.s32 1, %s1067_s14 }
   0x8   : > { %p33_p0 = scmp.ge.s32.totalorder %s31_s20, 2  ;;  %p96_p1 = scmp.ne.s32.totalorder %s1067_s14, %s1063_s13 }
   0x9   : > { %p97_p2 = scmp.eq.s32.totalorder %s1079_s17, 0  ;;  %p102_p3 = scmp.ne.s32.totalorder %s1063_s13, %s1059_s12 }
   0xa   : > { %s1439_s20 = smov (%p33_p0, %s31_s20), 0  ;;  %p103_p5 = scmp.eq.s32.totalorder %s865_s18, 0 }
   0xb   : > { %p1156_p4 = por %p97_p2, %p96_p1  ;;  %s84_s23 = ssub.s32 %s1075_s16, %s1439_s20 }
   0xc   : > { %p128_p6 = scmp.eq.s32.totalorder %s865_s18, 1  ;;  %p87_p7 = scmp.eq.s32.totalorder %s84_s23, 0 }
   0xd   : > { %p1162_p8 = por %p103_p5, %p102_p3  ;;  %p134_p10 = scmp.eq.s32.totalorder %s866_s19, 1 }
   0xe   : > { %p1166_p9 = por %p128_p6, %p96_p1  ;;  %p868_p12 = scmp.ge.s32.totalorder %s1079_s17, 2 }
   0xf   : > { %s1171_s26 = scalar_select %p87_p7, %s1067_s14, %s89_s21  }
  0x10   : > { %p1173_p11 = por %p134_p10, %p102_p3  ;;  %p901_p13 = scmp.lt.s32.totalorder %s1079_s17, 2 }
  0x11   : > { %s167_s28 = sand.u32 1, %s1067_s14   ;;  %s887_s30 = sshll.u32 %s1075_s16, 5 }
  0x12   : > { %s869_s29 = sshll.u32 %s167_s28, 5  ;;  %s178_s6 = scalar_lea.hbm %s1427_s2, %s887_s30 }
  0x13   : > { %s171_s7 = scalar_lea.vmem [#allocation2], %s869_s29  ;;  %s179_s9 = sshll.u32 %s178_s6, 4  ;;  %s180_s9 = int_to_ptr.hbm [resolvable:$true] %s179_s9 }
  0x14   : > { %s181_s8 = sshll.u32 %s171_s7, 4  ;;  %p894_p0 = pnand %p901_p13, %p1156_p4  ;;  %s182_s8 = int_to_ptr.vmem [resolvable:$true] %s181_s8 }
  0x15   : > { %p872_p1 = scmp.ge.s32.totalorder %s1079_s17, 1  ;;  %s168_s10 = scalar_lea.sflag [#allocation3], %s167_s28 }
  0x16   : > { %s1081_s11 = smov 64   ;;  %s1082_s18 = smov 4  }
  0x17   : > { %896 = dma.hbm_to_vmem [thread:$0]  (!%p894_p0), %s180_s9, 512, %s182_s8, %s168_s10, %s1081_s11, %s1081_s11, %s1082_s18  }
  0x18   : > { %p189_p2 = scmp.lt.s32.totalorder %s1079_s17, 3 }
  0x1a   : > { %p190_p3 = pnand %p872_p1, %p189_p2 }
  0x1b   : > { %s1189_s19 = sand.u32 (!%p190_p3), 1, %s1063_s13  }
  0x1c   : > { %193 = sbr.rel (%p190_p3) target bundleno = 504 (0x1f8), region = 32  ;;  %s873_s21 = sshll.u32 (!%p190_p3), %s1189_s19, 5 }
  0x1d   : > { %s196_s23 = scalar_lea.sflag (!%p190_p3), [#allocation3], %s1189_s19  ;;  %s199_s22 = scalar_lea.vmem (!%p190_p3), [#allocation2], %s873_s21 }
  0x21   : > { %1050 = dma.done.wait (%p1162_p8), %s196_s23, 512  }
  0x22   : > { %1052 = vsyncadd (%p1162_p8), %s196_s23, 4294966784  ;;  %p230_p4 = scmp.lt.s32.totalorder %s1071_s15, 1  ;;  %v1083_v0 = vmov 0   ;;  %v1205_v2 = vld [vmem:[%s199_s22 + $0x4] sm:$0xf]  ;;  %s1084_s6 = smov 32  }
  0x23   : > { %965 = vset.pattern.permute.xlu0 %v1083_v0  ;;  %587 = vrot.lane.b32.xlu1 %v1205_v2, %s1084_s6  ;;  %v1209_v3 = vld [vmem:[%s199_s22 + $0xc] sm:$0xf]  ;;  %v1213_v4 = vld [vmem:[%s199_s22] sm:$0xf]  ;;  %v1215_v5 = vld [vmem:[%s199_s22 + $0x8] sm:$0xf] }
  0x24   : > { %s231_s28 = scalar_select %p230_p4, %s1071_s15, 1  ;;  %593 = vrot.lane.b32.xlu2 %v1209_v3, %s1084_s6  ;;  %v1217_v6 = vld [vmem:[%s199_s22 + $0x10] sm:$0xf]  ;;  %v1225_v7 = vld [vmem:[%s199_s22 + $0x18] sm:$0xf]  ;;  %vm583_vm9 = vcmask 1047808  }
  0x25   : > { %v1227_v8 = vld [vmem:[%s199_s22 + $0x14] sm:$0xf]  ;;  %v1233_v9 = vld [vmem:[%s199_s22 + $0x1c] sm:$0xf]  ;;  %v966_v10 = vld [vmem:[%s1426_s1] ss:$0 sm:$0xff] }
  0x26   : > { %s875_s29 = sshll.u32 %s231_s28, 3  ;;  %v1085_v24 = vmov 683565275   ;;  %v1086_v26 = vmov 2475754826   ;;  %s1091_s8 = smov 16  }
  0x27   : > { %s236_s5 = scalar_lea.vmem %s1425_s0, %s875_s29  ;;  %v1087_v29 = vmov 2131351028   ;;  %v1088_v32 = vmov 2102212464   ;;  %v1089_v35 = vmov 920167782  }
  0x28   : > { %v239_v1 = vld [vmem:[%s236_s5] sm:$0xff]  ;;  %v1090_v38 = vmov 1326507024   ;;  %s1092_s9 = smov 112   ;;  %s1358_s10 = scalar_lea.vmem [#allocation5], %s873_s21 }
  0x29   : > { %243 = vperm.xlu0 %965, %v239_v1   ;;  %s888_s11 = sshll.u32 %s1071_s15, 5  ;;  %s760_s22 = sshll.u32 %s1358_s10, 4  ;;  %s761_s22 = int_to_ptr.vmem [resolvable:$true] %s760_s22 }
  0x2a   : > { %s759_s23 = scalar_lea.hbm %s1428_s3, %s888_s11  ;;  %s746_s15 = scalar_lea.sflag [#allocation4], %s1189_s19 }
  0x2b   : > { %590 = vrot.lane.b32.xlu1 %v1215_v5, %s1084_s6  ;;  %s762_s28 = sshll.u32 %s759_s23, 4  ;;  %s763_s28 = int_to_ptr.hbm [resolvable:$true] %s762_s28 }
  0x2c   : > { %596 = vrot.lane.b32.xlu2 %v1217_v6, %s1084_s6  ;;  %s1011_s29 = sshra.s32 %s763_s28, 4  ;;  %s1012_s29 = int_to_ptr.hbm [resolvable:$true] %s1011_s29 }
  0x2d   : > { %s1013_s30 = scalar_lea.hbm %s1012_s29, 32  ;;  %p1018_p8 = scmp.lt.s32.totalorder %s1012_s29, %s1428_s3 }
  0x2e   : > { %p1014_p5 = scmp.ne.s32.totalorder %s1012_s29, %s1013_s30 }
  0x30   : > { %p1015_p6 = pnand %p1014_p5, %p1166_p9 }
  0x31   : > { %584 = vrot.lane.b32.xlu0 %v1213_v4, %s1084_s6 }
  0x32   : > { %p1016_p7 = pneg %p1015_p6 }
  0x33   : > { %602 = vrot.lane.b32.xlu1 %v1225_v7, %s1084_s6 }
  0x34   : > { %605 = vrot.lane.b32.xlu2 %v1233_v9, %s1084_s6 }
  0x39   : > { %599 = vrot.lane.b32.xlu0 %v1227_v8, %s1084_s6 }
  0x9b   : > { %v244_v11 = vpop.permute.xlu0 %243 }
  0x9c   : > { %v1240_v12 = vmul.f32 %v966_v10, %v244_v11 }
  0x9e   : > { %v253_v13 = vand.u32 2139095040, %v1240_v12  ;;  %v250_v16 = vand.u32 2147483647, %v1240_v12  ;;  %vm252_vm13 = vcmp.lt.s32.totalorder %v1240_v12, 0 }
  0xa0   : > { %v254_v14 = vshrl.u32 %v253_v13, 23  ;;  %v257_v18 = vand.u32 8388607, %v250_v16  ;;  %vm251_vm14 = vcmp.le.f32.partialorder %v250_v16, 0.7853982 }
  0xa2   : > { %v876_v15 = vadd.s32 4294967169, %v254_v14  ;;  %v258_v22 = vor.u32 8388608, %v257_v18 }
  0xa4   : > { %v260_v17 = vadd.s32 1, %v876_v15  ;;  %v1257_v45 = vshll.u32 %v258_v22, 8 }
  0xa6   : > { %vm261_vm0 = vcmp.gt.s32.totalorder %v260_v17, 0  ;;  %v299_v54 = vand.u32 65535, %v1257_v45  ;;  %v300_v55 = vshrl.u32 %v1257_v45, 16 }
  0xa7   : > { %v262_v19 = vsel %vm261_vm0, %v260_v17, 0 }
  0xa8   : > { %v264_v20 = vand.u32 31, %v262_v19  ;;  %v1248_v23 = vshrl.u32 %v262_v19, 5 }
  0xaa   : > { %v1246_v21 = vsub.s32 32, %v264_v20  ;;  %v267_v25 = vshll.u32 %v1085_v24, %v264_v20  ;;  %v270_v27 = vshll.u32 %v1086_v26, %v264_v20  ;;  %v273_v31 = vshll.u32 %v1087_v29, %v264_v20 }
  0xab   : > { %v276_v34 = vshll.u32 %v1088_v32, %v264_v20  ;;  %v279_v37 = vshll.u32 %v1089_v35, %v264_v20  ;;  %vm282_vm1 = vcmp.lt.s32.totalorder %v1248_v23, 1  ;;  %vm285_vm2 = vcmp.lt.s32.totalorder %v1248_v23, 4 }
  0xac   : > { %v268_v28 = vshrl.u32 %v1086_v26, %v1246_v21  ;;  %v271_v30 = vshrl.u32 %v1087_v29, %v1246_v21  ;;  %v274_v33 = vshrl.u32 %v1088_v32, %v1246_v21  ;;  %v277_v36 = vshrl.u32 %v1089_v35, %v1246_v21 }
  0xad   : > { %v280_v39 = vshrl.u32 %v1090_v38, %v1246_v21  ;;  %vm284_vm3 = vcmp.lt.s32.totalorder %v1248_v23, 3  ;;  %vm283_vm4 = vcmp.lt.s32.totalorder %v1248_v23, 2 }
  0xae   : > { %v269_v40 = vor.u32 %v268_v28, %v267_v25  ;;  %v272_v41 = vor.u32 %v271_v30, %v270_v27  ;;  %v275_v42 = vor.u32 %v274_v33, %v273_v31  ;;  %v278_v43 = vor.u32 %v277_v36, %v276_v34 }
  0xaf   : > { %v281_v44 = vor.u32 %v280_v39, %v279_v37  ;;  %v266_v30 = vshrl.u32 %v1085_v24, %v1246_v21 }
  0xb0   : > { %v290_v46 = vsel %vm282_vm1, %v269_v40, %v272_v41  ;;  %v294_v47 = vsel %vm282_vm1, %v272_v41, %v275_v42  ;;  %v291_v48 = vsel %vm285_vm2, %v278_v43, 920167782  ;;  %v287_v27 = vsel %vm285_vm2, %v275_v42, 2102212464 }
  0xb1   : > { %v295_v49 = vsel %vm285_vm2, %v281_v44, 1326507024  ;;  %v292_v50 = vsel %vm284_vm3, %v275_v42, %v291_v48  ;;  %v286_v36 = vsel %vm282_vm1, %v266_v30, %v269_v40  ;;  %v288_v37 = vsel %vm284_vm3, %v272_v41, %v287_v27 }
  0xb2   : > { %v296_v51 = vsel %vm284_vm3, %v278_v43, %v295_v49  ;;  %v293_v52 = vsel %vm283_vm4, %v290_v46, %v292_v50  ;;  %v289_v21 = vsel %vm283_vm4, %v286_v36, %v288_v37  ;;  %v588_v50 = vpop.permute.xlu1 %587 }
  0xb3   : > { %v297_v53 = vsel %vm283_vm4, %v294_v47, %v296_v51  ;;  %v323_v58 = vand.u32 65535, %v293_v52  ;;  %v324_v59 = vshrl.u32 %v293_v52, 16  ;;  %v585_v47 = vpop.permute.xlu0 %584  ;;  %v343_v41 = vmul.u32 %v1257_v45, %v289_v21  ;;  %v594_v52 = vpop.permute.xlu2 %593 }
  0xb4   : > { %v301_v56 = vand.u32 65535, %v297_v53  ;;  %v302_v57 = vshrl.u32 %v297_v53, 16  ;;  %v589_v23 = vsel %vm583_vm9, %v588_v50, %v1205_v2 }
  0xb5   : > { %v326_v62 = vmul.u32 %v324_v59, %v299_v54  ;;  %v327_v63 = vmul.u32 %v323_v58, %v300_v55  ;;  %v325_v13 = vmul.u32 %v323_v58, %v299_v54  ;;  %v328_v18 = vmul.u32 %v324_v59, %v300_v55  ;;  %610 = vrot.lane.b32.xlu1 %v589_v23, %s1084_s6 }
  0xb6   : > { %v304_v60 = vmul.u32 %v302_v57, %v299_v54  ;;  %v305_v61 = vmul.u32 %v301_v56, %v300_v55  ;;  %v303_v1 = vmul.u32 %v301_v56, %v299_v54  ;;  %v306_v11 = vmul.u32 %v302_v57, %v300_v55 }
  0xb7   : > { %v329_v14 = vshll.u32 %v326_v62, 16  ;;  %v331_v20 = vshll.u32 %v327_v63, 16  ;;  %v330_v34 = vshrl.u32 %v326_v62, 16  ;;  %v332_v42 = vshrl.u32 %v327_v63, 16 }
  0xb8   : > { %v307_v10 = vshll.u32 %v304_v60, 16  ;;  %v309_v15 = vshll.u32 %v305_v61, 16  ;;  %v308_v31 = vshrl.u32 %v304_v60, 16  ;;  %v310_v38 = vshrl.u32 %v305_v61, 16 }
  0xb9   : > { %vm333_vm6 = vc.u32 %v325_v13, %v329_v14  ;;  %v335_v22 = vadd.s32 %v329_v14, %v325_v13  ;;  %v595_v54 = vsel %vm583_vm9, %v594_v52, %v1209_v3 }
  0xba   : > { %vm311_vm5 = vc.u32 %v303_v1, %v307_v10  ;;  %v313_v17 = vadd.s32 %v307_v10, %v303_v1  ;;  %v334_v26 = vsel %vm333_vm6, 1, %v1083_v0  ;;  %v591_v57 = vpop.permute.xlu1 %590  ;;  %vm736_vm6 = vcmask 257024  }
  0xbb   : > { %v312_v19 = vsel %vm311_vm5, 1, %v1083_v0  ;;  %v336_v29 = vadd.s32 %v334_v26, %v328_v18  ;;  %vm337_vm8 = vc.u32 %v335_v22, %v331_v20  ;;  %v339_v46 = vadd.s32 %v335_v22, %v331_v20  ;;  %v597_v58 = vpop.permute.xlu2 %596  ;;  %v600_v10 = vpop.permute.xlu0 %599 }
  0xbc   : > { %v314_v25 = vadd.s32 %v312_v19, %v306_v11  ;;  %vm315_vm7 = vc.u32 %v313_v17, %v309_v15  ;;  %v338_v33 = vsel %vm337_vm8, 1, %v1083_v0  ;;  %v592_v59 = vsel %vm583_vm9, %v591_v57, %v1215_v5 }
  0xbd   : > { %v316_v28 = vsel %vm315_vm7, 1, %v1083_v0  ;;  %v340_v35 = vadd.s32 %v338_v33, %v336_v29  ;;  %v586_v0 = vsel %vm583_vm9, %v585_v47, %v1213_v4  ;;  %612 = vrot.lane.b32.xlu2 %v592_v59, %s1084_s6  ;;  %v598_v62 = vsel %vm583_vm9, %v597_v58, %v1217_v6 }
  0xbe   : > { %v318_v32 = vadd.s32 %v316_v28, %v314_v25  ;;  %608 = vrot.lane.b32.xlu0 %v586_v0, %s1084_s6  ;;  %616 = vrot.lane.b32.xlu1 %v598_v62, %s1084_s6  ;;  %v601_v14 = vsel %vm583_vm9, %v600_v10, %v1227_v8  ;;  %vm393_vm5 = vweird.f32 %v1240_v12 }
  0xbf   : > { %v341_v43 = vadd.s32 %v340_v35, %v330_v34 }
  0xc0   : > { %v319_v39 = vadd.s32 %v318_v32, %v308_v31 }
  0xc1   : > { %v342_v24 = vadd.s32 %v341_v43, %v332_v42 }
  0xc2   : > { %v320_v44 = vadd.s32 %v319_v39, %v310_v38  ;;  %v603_v1 = vpop.permute.xlu1 %602 }
  0xc3   : > { %v346_v40 = vadd.s32 1, %v342_v24  ;;  %v604_v11 = vsel %vm583_vm9, %v603_v1, %v1225_v7  ;;  %v606_v19 = vpop.permute.xlu2 %605 }
  0xc4   : > { %vm345_vm10 = vc.u32 %v320_v44, %v339_v46  ;;  %v344_v15 = vadd.s32 %v339_v46, %v320_v44  ;;  %v607_v20 = vsel %vm583_vm9, %v606_v19, %v1233_v9 }
  0xc5   : > { %v347_v48 = vsel %vm345_vm10, %v346_v40, %v342_v24  ;;  %618 = vrot.lane.b32.xlu2 %v601_v14, %s1084_s6 }
  0xc6   : > { %v348_v49 = vadd.s32 %v347_v48, %v343_v41  ;;  %614 = vrot.lane.b32.xlu0 %v595_v54, %s1084_s6  ;;  %622 = vrot.lane.b32.xlu1 %v607_v20, %s1084_s6 }
  0xc8   : > { %v349_v51 = vadd.s32 536870912, %v348_v49 }
  0xca   : > { %v350_v53 = vshrl.u32 %v349_v51, 30 }
  0xcc   : > { %v351_v55 = vshll.u32 %v350_v53, 30  ;;  %v374_v35 = vsub.s32 4, %v350_v53 }
  0xce   : > { %v352_v56 = vsub.s32 %v348_v49, %v351_v55  ;;  %620 = vrot.lane.b32.xlu0 %v604_v11, %s1084_s6  ;;  %v375_v42 = vsel %vm252_vm13, %v374_v35, %v350_v53  ;;  %s1017_s6 = scalar_lea.hbm %s1428_s3, 64 }
  0xcf   : > { %v377_v46 = vsel %vm251_vm14, 0, %v375_v42  ;;  %p1019_p10 = scmp.lt.s32.totalorder %s1017_s6, %s1013_s30 }
  0xd0   : > { %vm353_vm11 = vcmp.lt.s32.totalorder %v352_v56, 0  ;;  %v354_v45 = vsub.s32 0, %v352_v56  ;;  %v556_v40 = vadd.s32 3, %v377_v46  ;;  %v394_v49 = vand.u32 3, %v377_v46 }
  0xd1   : > { %p1020_p13 = por %p1019_p10, %p1018_p8 }
  0xd2   : > { %v355_v60 = vsel %vm353_vm11, %v354_v45, %v352_v56  ;;  %v557_v51 = vand.u32 3, %v556_v40  ;;  %vm399_vm15 = vcmp.eq.s32.totalorder %v394_v49, 2  ;;  %vm395_vm0 = vcmp.lt.s32.totalorder %v394_v49, 2 }
  0xd3   : > { %v356_v61 = vclz %v355_v60  ;;  %vm396_vm1 = vcmp.eq.s32.totalorder %v394_v49, 0  ;;  %p1021_p0 = pnand %p1020_p13, %p1016_p7 }
  0xd4   : > { %vm559_vm2 = vcmp.eq.s32.totalorder %v557_v51, 0  ;;  %vm562_vm3 = vcmp.eq.s32.totalorder %v557_v51, 2  ;;  %vm558_vm4 = vcmp.lt.s32.totalorder %v557_v51, 2 }
  0xd5   : > { %v877_v63 = vadd.s32 4294967294, %v356_v61 }
  0xd7   : > { %vm878_vm12 = vcmp.lt.s32.totalorder %v877_v63, 0 }
  0xd8   : > { %v359_v13 = vsel %vm878_vm12, 0, %v877_v63 }
  0xd9   : > { %v360_v17 = vsub.s32 32, %v359_v13  ;;  %v364_v18 = vsub.s32 4294967266, %v359_v13  ;;  %v361_v22 = vshll.u32 %v352_v56, %v359_v13 }
  0xdb   : > { %v362_v25 = vshrl.u32 %v344_v15, %v360_v17  ;;  %v365_v26 = vadd.s32 127, %v364_v18 }
  0xdd   : > { %v363_v27 = vor.u32 %v362_v25, %v361_v22  ;;  %v366_v28 = vshll.u32 %v365_v26, 23 }
  0xdf   : > { %v367_v29 = vor.u32 4788187, %v366_v28  ;;  %v370_v31 = vcvt.s32.f32 %v363_v27 }
  0xe1   : > { %v368_v30 = vand.u32 2147483647, %v367_v29 }
  0xe3   : > { %v371_v32 = vmul.f32 %v370_v31, %v368_v30 }
  0xe5   : > { %v372_v33 = vxor.u32 2147483648, %v371_v32 }
  0xe7   : > { %v373_v34 = vsel %vm252_vm13, %v372_v33, %v371_v32 }
  0xe8   : > { %v376_v36 = vsel %vm251_vm14, %v1240_v12, %v373_v34 }
  0xe9   : > { %v378_v37 = vmul.f32 %v376_v36, %v376_v36 }
  0xeb   : > { %v379_v38 = vmul.f32 -0.001358992, %v378_v37  ;;  %v386_v39 = vmul.f32 -0.00019511016, %v378_v37 }
  0xed   : > { %v380_v43 = vadd.f32 0.041655596, %v379_v38  ;;  %v387_v44 = vadd.f32 0.008332121, %v386_v39 }
  0xef   : > { %v381_v21 = vmul.f32 %v380_v43, %v378_v37  ;;  %v388_v24 = vmul.f32 %v387_v44, %v378_v37 }
  0xf1   : > { %v382_v47 = vadd.f32 -0.4999988, %v381_v21  ;;  %v389_v0 = vadd.f32 -0.16666654, %v388_v24 }
  0xf3   : > { %v383_v41 = vmul.f32 %v382_v47, %v378_v37  ;;  %v390_v48 = vmul.f32 %v389_v0, %v378_v37 }
  0xf5   : > { %v384_v16 = vadd.f32 1.0, %v383_v41  ;;  %v391_v50 = vadd.f32 1.0, %v390_v48 }
  0xf7   : > { %v392_v52 = vmul.f32 %v391_v50, %v376_v36  ;;  %v400_v23 = vxor.u32 2147483648, %v384_v16 }
  0xf9   : > { %v397_v54 = vxor.u32 2147483648, %v392_v52  ;;  %v401_v55 = vsel %vm399_vm15, %v400_v23, %v392_v52  ;;  %v564_v57 = vsel %vm562_vm3, %v400_v23, %v392_v52 }
  0xfb   : > { %v398_v53 = vsel %vm396_vm1, %v384_v16, %v397_v54  ;;  %v561_v56 = vsel %vm559_vm2, %v384_v16, %v397_v54 }
  0xfc   : > { %v402_v45 = vsel %vm395_vm0, %v398_v53, %v401_v55  ;;  %v565_v58 = vsel %vm558_vm4, %v561_v56, %v564_v57 }
  0xfd   : > { %v1324_v59 = vsel %vm393_vm5, nan, %v402_v45  ;;  %v566_v60 = vsel %vm393_vm5, nan, %v565_v58 }
  0xfe   : > { %v656_v61 = vperm.slane %v566_v60, 0  ;;  %v569_v62 = vrot.slane %v566_v60, 2  ;;  %v568_v63 = vrot.slane %v566_v60, 1  ;;  %v570_v11 = vrot.slane %v566_v60, 3 }
  0xff   : > { %v572_v13 = vrot.slane %v566_v60, 5  ;;  %v571_v14 = vrot.slane %v566_v60, 4  ;;  %v573_v18 = vrot.slane %v566_v60, 6  ;;  %v574_v19 = vrot.slane %v566_v60, 7 }
 0x100   : > { %664 = vrot.lane.b32.xlu2 %v656_v61, %s1091_s8  ;;  %v658_v1 = vperm.slane %v569_v62, 0  ;;  %v657_v10 = vperm.slane %v568_v63, 0  ;;  %v659_v15 = vperm.slane %v570_v11, 0  ;;  %v405_v54 = vrot.slane %v1324_v59, 1 }
 0x101   : > { %v661_v12 = vperm.slane %v572_v13, 0  ;;  %v660_v17 = vperm.slane %v571_v14, 0  ;;  %v662_v20 = vperm.slane %v573_v18, 0  ;;  %v663_v22 = vperm.slane %v574_v19, 0 }
 0x102   : > { %668 = vrot.lane.b32.xlu1 %v658_v1, %s1091_s8  ;;  %666 = vrot.lane.b32.xlu0 %v657_v10, %s1091_s8  ;;  %v632_v55 = vperm.slane %v1324_v59, 0  ;;  %v633_v53 = vperm.slane %v405_v54, 0  ;;  %v407_v57 = vrot.slane %v1324_v59, 3  ;;  %v408_v61 = vrot.slane %v1324_v59, 4 }
 0x104   : > { %v648_v56 = vmul.f32 %v632_v55, %v1213_v4  ;;  %v649_v60 = vmul.f32 %v633_v53, %v1205_v2  ;;  %v635_v63 = vperm.slane %v407_v57, 0  ;;  %v636_v1 = vperm.slane %v408_v61, 0 }
 0x106   : > { %v651_v10 = vmul.f32 %v635_v63, %v1209_v3  ;;  %v652_v14 = vmul.f32 %v636_v1, %v1217_v6 }
 0x108   : > { %670 = vrot.lane.b32.xlu2 %v659_v15, %s1091_s8  ;;  %v411_v15 = vrot.slane %v1324_v59, 7 }
 0x10a   : > { %674 = vrot.lane.b32.xlu1 %v661_v12, %s1091_s8  ;;  %672 = vrot.lane.b32.xlu0 %v660_v17, %s1091_s8  ;;  %v639_v19 = vperm.slane %v411_v15, 0 }
 0x110   : > { %676 = vrot.lane.b32.xlu2 %v662_v20, %s1091_s8 }
 0x112   : > { %678 = vrot.lane.b32.xlu0 %v663_v22, %s1091_s8 }
 0x117   : > { %v613_v25 = vpop.permute.xlu2 %612 }
 0x118   : > { %v626_v44 = vsel %vm583_vm9, %v613_v25, %v1215_v5  ;;  %v406_v25 = vrot.slane %v1324_v59, 2 }
 0x11f   : > { %v619_v26 = vpop.permute.xlu2 %618 }
 0x120   : > { %v629_v41 = vsel %vm583_vm9, %v619_v26, %v1227_v8 }
 0x127   : > { %v611_v28 = vpop.permute.xlu1 %610 }
 0x128   : > { %v625_v21 = vsel %vm583_vm9, %v611_v28, %v1205_v2  ;;  %v410_v2 = vrot.slane %v1324_v59, 6  ;;  %v634_v28 = vperm.slane %v406_v25, 0 }
 0x12a   : > { %v638_v18 = vperm.slane %v410_v2, 0 }
 0x130   : > { %v609_v27 = vpop.permute.xlu0 %608  ;;  %v617_v33 = vpop.permute.xlu1 %616 }
 0x131   : > { %v624_v29 = vsel %vm583_vm9, %v609_v27, %v1213_v4  ;;  %v628_v48 = vsel %vm583_vm9, %v617_v33, %v1217_v6  ;;  %v655_v6 = vmul.f32 %v639_v19, %v1233_v9 }
 0x138   : > { %v615_v32 = vpop.permute.xlu0 %614  ;;  %v623_v42 = vpop.permute.xlu1 %622 }
 0x139   : > { %v627_v35 = vsel %vm583_vm9, %v615_v32, %v1209_v3  ;;  %v631_v51 = vsel %vm583_vm9, %v623_v42, %v1233_v9  ;;  %v654_v3 = vmul.f32 %v638_v18, %v1225_v7 }
 0x140   : > { %v621_v37 = vpop.permute.xlu0 %620 }
 0x141   : > { %v630_v38 = vsel %vm583_vm9, %v621_v37, %v1225_v7  ;;  %v409_v7 = vrot.slane %v1324_v59, 5 }
 0x143   : > { %v637_v9 = vperm.slane %v409_v7, 0 }
 0x145   : > { %v653_v32 = vmul.f32 %v637_v9, %v1227_v8 }
 0x15a   : > { %v665_v30 = vpop.permute.xlu2 %664 }
 0x15b   : > { %v688_v31 = vmul.f32 %v665_v30, %v624_v29  ;;  %v650_v29 = vmul.f32 %v634_v28, %v1215_v5 }
 0x15d   : > { %704 = vrot.lane.b32.xlu1 %v688_v31, %s1092_s9 }
 0x162   : > { %v671_v34 = vpop.permute.xlu2 %670 }
 0x163   : > { %v691_v36 = vmul.f32 %v671_v34, %v627_v35 }
 0x165   : > { %710 = vrot.lane.b32.xlu1 %v691_v36, %s1092_s9 }
 0x16a   : > { %v677_v39 = vpop.permute.xlu2 %676 }
 0x16b   : > { %v694_v43 = vmul.f32 %v677_v39, %v630_v38 }
 0x16d   : > { %716 = vrot.lane.b32.xlu1 %v694_v43, %s1092_s9 }
 0x174   : > { %v669_v46 = vpop.permute.xlu1 %668  ;;  %v667_v24 = vpop.permute.xlu0 %666 }
 0x175   : > { %v690_v47 = vmul.f32 %v669_v46, %v626_v44  ;;  %v689_v0 = vmul.f32 %v667_v24, %v625_v21 }
 0x177   : > { %708 = vrot.lane.b32.xlu0 %v690_v47, %s1092_s9  ;;  %706 = vrot.lane.b32.xlu2 %v689_v0, %s1092_s9 }
 0x17c   : > { %v675_v40 = vpop.permute.xlu1 %674  ;;  %v673_v49 = vpop.permute.xlu0 %672 }
 0x17d   : > { %v693_v16 = vmul.f32 %v675_v40, %v629_v41  ;;  %v692_v50 = vmul.f32 %v673_v49, %v628_v48 }
 0x17f   : > { %714 = vrot.lane.b32.xlu0 %v693_v16, %s1092_s9  ;;  %712 = vrot.lane.b32.xlu2 %v692_v50, %s1092_s9 }
 0x184   : > { %v679_v52 = vpop.permute.xlu0 %678 }
 0x185   : > { %v695_v23 = vmul.f32 %v679_v52, %v631_v51 }
 0x187   : > { %718 = vrot.lane.b32.xlu2 %v695_v23, %s1092_s9 }
 0x1cf   : > { %v705_v45 = vpop.permute.xlu1 %704 }
 0x1d0   : > { %v728_v58 = vadd.f32 %v705_v45, %v648_v56 }
 0x1d1   : > { %v707_v62 = vpop.permute.xlu2 %706 }
 0x1d2   : > { %737 = vst.msk [vmem:[%s1358_s10] sm:$0xf] %vm736_vm6, %v728_v58  ;;  %v729_v4 = vadd.f32 %v707_v62, %v649_v60 }
 0x1d4   : > { %738 = vst.msk [vmem:[%s1358_s10 + $0x4] sm:$0xf] %vm736_vm6, %v729_v4 }
 0x1d7   : > { %v711_v11 = vpop.permute.xlu1 %710 }
 0x1d8   : > { %v731_v13 = vadd.f32 %v711_v11, %v651_v10 }
 0x1d9   : > { %v713_v12 = vpop.permute.xlu2 %712 }
 0x1da   : > { %740 = vst.msk [vmem:[%s1358_s10 + $0xc] sm:$0xf] %vm736_vm6, %v731_v13  ;;  %v732_v17 = vadd.f32 %v713_v12, %v652_v14 }
 0x1dc   : > { %741 = vst.msk [vmem:[%s1358_s10 + $0x10] sm:$0xf] %vm736_vm6, %v732_v17 }
 0x1df   : > { %v717_v20 = vpop.permute.xlu1 %716 }
 0x1e0   : > { %v734_v22 = vadd.f32 %v717_v20, %v654_v3 }
 0x1e1   : > { %v719_v26 = vpop.permute.xlu2 %718 }
 0x1e2   : > { %743 = vst.msk [vmem:[%s1358_s10 + $0x18] sm:$0xf] %vm736_vm6, %v734_v22  ;;  %v735_v27 = vadd.f32 %v719_v26, %v655_v6 }
 0x1e4   : > { %744 = vst.msk [vmem:[%s1358_s10 + $0x1c] sm:$0xf] %vm736_vm6, %v735_v27 }
 0x1e9   : > { %v709_v30 = vpop.permute.xlu0 %708 }
 0x1ea   : > { %v730_v31 = vadd.f32 %v709_v30, %v650_v29 }
 0x1ec   : > { %739 = vst.msk [vmem:[%s1358_s10 + $0x8] sm:$0xf] %vm736_vm6, %v730_v31 }
 0x1f1   : > { %v715_v33 = vpop.permute.xlu0 %714 }
 0x1f2   : > { %v733_v5 = vadd.f32 %v715_v33, %v653_v32 }
 0x1f4   : > { %742 = vst.msk [vmem:[%s1358_s10 + $0x14] sm:$0xf] %vm736_vm6, %v733_v5 }
 0x1f5   : > { %1024 = shalt.err (!%p1021_p0)
}
 0x1f6   : > { %s1093_s19 = smov 64   ;;  %s1094_s8 = smov 4  }
 0x1f7   : > { %891 = dma.vmem_to_hbm [thread:$0]  (%p1166_p9), %s761_s22, 512, %s763_s28, %s746_s15, %s1093_s19, %s1093_s19, %s1094_s8  }
 0x1f8 PF: > { %s777_s9 = sand.u32 1, %s1059_s12   ;;  %p898_p1 = pnand %p868_p12, %p1173_p11 }
 0x1f9   : > { %s778_s10 = scalar_lea.sflag [#allocation4], %s777_s9 }
 0x1fa   : > { %p899_p2 = pneg %p898_p1 }
 0x1fc   : > { %1054 = dma.done.wait (%p899_p2), %s778_s10, 512  }
 0x1fd   : > { %1056 = vsyncadd (%p899_p2), %s778_s10, 4294966784  ;;  %s19_s17 = sadd.s32 1, %s1079_s17   ;;  %s1433_s12 = smov %s1063_s13 }
 0x1fe   : > { %p16_p3 = scmp.ge.s32.totalorder %s19_s17, 4   ;;  %s1434_s13 = smov %s1067_s14 }
 0x1ff   : > { %s1435_s14 = smov %s1171_s26  ;;  %s1436_s15 = smov %s1075_s16 }
 0x200   : > { %s1437_s16 = smov %s1439_s20  ;;  %18 = sbr.rel (!%p16_p3) target bundleno = 6 (0x6), region = 80 }
 0x205   :  { %784 = vsyncpa [#allocation3], 1 }
 0x206   :  { %786 = vsyncpa [#allocation3 + $0x1], 1 }
 0x207   :  { %787 = vsyncpa [#allocation4], 1 }
 0x208   :  { %789 = vsyncpa [#allocation4 + $0x1], 1 }

</bundles_post_ra>
